<compile_context>
chip_gen: v6e
topology: v6e:2x2x1
jax: 0.10.0
libtpu: 0.0.40
codegen_flags: <defaults>
</compile_context>

<pallas_src>
import functools

import jax
import jax.numpy as jnp
from jax.experimental import pallas as pl
from jax.experimental.pallas import tpu as pltpu


def _tv_reduce_kernel(x_ref, acc_ref):
    """Accumulates per-pixel partial sums for the 9 reductions.

    x_ref   : (p, H, W)      native-dtype block of `p` image planes.
    acc_ref : (1, 9, H, W)   f32 accumulator, resident across the step axis:
      [0..3]  running sum of diff_k ** 2  (k = 1..4)  -> torch.norm via sqrt
      [4..7]  running sum of |diff_k|     (k = 1..4)  -> .abs().mean() via /n
      [8]     running sum of x ** 2                    -> torch.norm(inputs)
    """
    @pl.when(pl.program_id(1) == 0)
    def _init():
        acc_ref[...] = jnp.zeros_like(acc_ref)

    x = x_ref[...].astype(jnp.float32)          # (p, H, W), cast inside kernel
    p, h, w = x.shape

    # Shifted copies (wrap values are masked away below).
    #   x_r [q, i, j] = x[q, i, j + 1 (mod W)]
    #   x_d [q, i, j] = x[q, i + 1 (mod H), j]
    #   x_dr[q, i, j] = x[q, i + 1, j + 1]
    x_r = jnp.roll(x, shift=-1, axis=2)
    x_d = jnp.roll(x, shift=-1, axis=1)
    x_dr = jnp.roll(x_d, shift=-1, axis=2)

    row = jax.lax.broadcasted_iota(jnp.int32, (p, h, w), 1)
    col = jax.lax.broadcasted_iota(jnp.int32, (p, h, w), 2)
    row_ok = row < (h - 1)
    col_ok = col < (w - 1)
    both_ok = jnp.logical_and(row_ok, col_ok)
    zero = jnp.zeros_like(x)

    def _accum(k_sq, k_abs, d):
        # Reduce only over the plane axis (cheap vreg adds, no cross-lane
        # work); the cross-lane reduction happens once, in the JAX wrapper.
        acc_ref[0, k_sq] += jnp.sum(d * d, axis=0)
        acc_ref[0, k_abs] += jnp.sum(jnp.abs(d), axis=0)

    # One diff at a time to keep live vreg pressure low.
    _accum(0, 4, jnp.where(col_ok, x - x_r, zero))     # diff1: horizontal
    _accum(1, 5, jnp.where(row_ok, x - x_d, zero))     # diff2: vertical
    _accum(2, 6, jnp.where(both_ok, x_d - x_r, zero))  # diff3: anti-diagonal
    _accum(3, 7, jnp.where(both_ok, x - x_dr, zero))   # diff4: diagonal
    acc_ref[0, 8] += jnp.sum(x * x, axis=0)            # global sum of squares


def _reduce_sums(inputs):
    """Run the tiled Pallas reduction kernel; returns 9 f32 partial sums."""
    B, C, H, W = inputs.shape
    bc = B * C
    x3 = inputs.reshape(bc, H, W)               # contiguous view, no copy/cast

    # --- tile selection (static, shape-derived) -----------------------------
    plane_bytes = H * W * inputs.dtype.itemsize
    # Keep each input block <= ~2 MiB (double-buffered -> <= ~4 MiB), safely
    # under the 32 MiB scoped-VMEM budget on every generation (v7x's physical
    # VMEM is only 64 MiB), and keep at least a few grid steps for pipelining.
    vmem_budget_planes = max(1, (2 * 1024 * 1024) // max(plane_bytes, 1))
    cap = max(1, min(bc, vmem_budget_planes, max(1, bc // 4)))
    p = max(d for d in range(1, cap + 1) if bc % d == 0)
    num_blocks = bc // p
    # Split the blocks across 2 independent shards when possible so the
    # "parallel" grid axis can use both TensorCores on v7x.
    s_shards = 2 if (num_blocks % 2 == 0 and num_blocks >= 2) else 1
    g_steps = num_blocks // s_shards
    # NOTE: for extremely large single planes (> ~2 MiB) the block is one full
    # plane; tiling H as well would be the next refinement.

    out = pl.pallas_call(
        _tv_reduce_kernel,
        out_shape=jax.ShapeDtypeStruct((s_shards, 9, H, W), jnp.float32),
        grid_spec=pltpu.PrefetchScalarGridSpec(
            num_scalar_prefetch=0,
            grid=(s_shards, g_steps),
            in_specs=[
                pl.BlockSpec((p, H, W), lambda s, g: (s * g_steps + g, 0, 0)),
            ],
            out_specs=pl.BlockSpec((1, 9, H, W), lambda s, g: (s, 0, 0, 0)),
        ),
        compiler_params=pltpu.CompilerParams(
            dimension_semantics=("parallel", "arbitrary"),
            vmem_limit_bytes=32 * 1024 * 1024,
        ),
    )(x3)

    # Single tiny cross-lane reduction: (s_shards, 9, H, W) -> (9,)
    return jnp.sum(out, axis=(0, 2, 3))


@functools.partial(
    jax.jit,
    static_argnames=("alpha_main", "alpha_tv_l1", "alpha_tv_l2", "alpha_l2", "alpha_f"),
)
def image_prompt_loss(
    inputs,
    r_features,                 # f32[L] : per-layer `mod.r_feature` scalar values
    alpha_main=1.0,             # kept for parity with __init__; unused in forward
    alpha_tv_l1=0.0,
    alpha_tv_l2=2.5e-05,
    alpha_l2=3e-08,
    alpha_f=1.0,
):
    del alpha_main  # not used in the PyTorch forward either
    B, C, H, W = inputs.shape

    s = _reduce_sums(inputs)
    sq1, sq2, sq3, sq4, ab1, ab2, ab3, ab4, sqx = (s[i] for i in range(9))

    # element counts of each diff tensor (for .mean())
    n1 = B * C * H * (W - 1)
    n2 = B * C * (H - 1) * W
    n3 = B * C * (H - 1) * (W - 1)
    n4 = n3

    # r_prior
    loss_var_l2 = jnp.sqrt(sq1) + jnp.sqrt(sq2) + jnp.sqrt(sq3) + jnp.sqrt(sq4)
    loss_var_l1 = (
        (ab1 / 255.0) / n1
        + (ab2 / 255.0) / n2
        + (ab3 / 255.0) / n3
        + (ab4 / 255.0) / n4
    ) * 255.0

    # r_l2
    r_l2 = jnp.sqrt(sqx)

    # r_feature: sum of per-layer precomputed scalar statistics.
    # TODO(synk): the PyTorch BN-hook modules (`r_feature_layers`) have no
    # Pallas equivalent; their per-layer scalars are passed in precomputed.
    r_feature = jnp.sum(r_features)

    loss = (
        alpha_tv_l2 * loss_var_l2
        + alpha_tv_l1 * loss_var_l1
        + alpha_l2 * r_l2
        + alpha_f * r_feature
    )
    return loss


def _reference_loss(inputs, r_features, alpha_tv_l1=0.0, alpha_tv_l2=2.5e-05,
                    alpha_l2=3e-08, alpha_f=1.0):
    """Pure-JAX reference mirroring the PyTorch forward (for sanity check)."""
    x = inputs.astype(jnp.float32)
    d1 = x[:, :, :, :-1] - x[:, :, :, 1:]
    d2 = x[:, :, :-1, :] - x[:, :, 1:, :]
    d3 = x[:, :, 1:, :-1] - x[:, :, :-1, 1:]
    d4 = x[:, :, :-1, :-1] - x[:, :, 1:, 1:]
    loss_var_l2 = (
        jnp.linalg.norm(d1.ravel()) + jnp.linalg.norm(d2.ravel())
        + jnp.linalg.norm(d3.ravel()) + jnp.linalg.norm(d4.ravel())
    )
    loss_var_l1 = (
        jnp.mean(jnp.abs(d1) / 255.0) + jnp.mean(jnp.abs(d2) / 255.0)
        + jnp.mean(jnp.abs(d3) / 255.0) + jnp.mean(jnp.abs(d4) / 255.0)
    ) * 255.0
    r_l2 = jnp.linalg.norm(x.ravel())
    r_feature = jnp.sum(r_features)
    return (alpha_tv_l2 * loss_var_l2 + alpha_tv_l1 * loss_var_l1
            + alpha_l2 * r_l2 + alpha_f * r_feature)


if __name__ == "__main__":
    key = jax.random.PRNGKey(0)
    k_img, k_feat = jax.random.split(key)

    # Small shapes consistent with the module: NCHW image-like prompt tensor.
    B, C, H, W = 2, 4, 16, 16
    x = jax.random.normal(k_img, (B, C, H, W), dtype=jnp.float32)

    # Deterministic synthetic `r_feature` values for 3 hooked layers
    # (in PyTorch these would be BN-statistics regularizer scalars).
    r_features = jax.random.uniform(k_feat, (3,), dtype=jnp.float32)

    loss = image_prompt_loss(x, r_features)
    loss = jax.block_until_ready(loss)

    ref = jax.block_until_ready(_reference_loss(x, r_features))
    assert jnp.allclose(loss, ref, rtol=1e-5, atol=1e-6), (loss, ref)

    print("KERNEL_OK")
</pallas_src>

<mosaic_0001>
module attributes {stable_mosaic.version = 11 : i64} {
  func.func @_tv_reduce_kernel(%arg0: i32, %arg1: i32, %arg2: memref<2x16x16xf32, #tpu.memory_space<vmem>>, %arg3: memref<1x9x16x16xf32, #tpu.memory_space<vmem>>) attributes {dimension_semantics = [#tpu.dimension_semantics<parallel>, #tpu.dimension_semantics<arbitrary>], iteration_bounds = array<i64: 2, 2>, scalar_prefetch = 0 : i64, scratch_operands = 0 : i64, tpu.core_type = #tpu.core_type<tc>, window_params = [{transform_indices = @transform_0, window_bounds = array<i64: 2, 16, 16>}, {transform_indices = @transform_1, window_bounds = array<i64: 1, 9, 16, 16>}]} {
    %c0_i32 = arith.constant 0 : i32
    %0 = arith.cmpi eq, %arg1, %c0_i32 : i32
    %1 = arith.extui %0 : i1 to i32
    %c0_i32_0 = arith.constant 0 : i32
    %2 = arith.cmpi ne, %1, %c0_i32_0 : i32
    scf.if %2 {
      %cst_77 = arith.constant 0.000000e+00 : f32
      %101 = vector.broadcast %cst_77 : f32 to vector<1x9x16x16xf32>
      %c0_78 = arith.constant 0 : index
      %c0_79 = arith.constant 0 : index
      %c0_80 = arith.constant 0 : index
      %c0_81 = arith.constant 0 : index
      %102 = vector.load %arg3[%c0_78, %c0_79, %c0_80, %c0_81] : memref<1x9x16x16xf32, #tpu.memory_space<vmem>>, vector<1x9x16x16xf32>
      tpu.vector_store %arg3[%c0_78, %c0_79, %c0_80, %c0_81], %101 {strides = array<i32>} : memref<1x9x16x16xf32, #tpu.memory_space<vmem>>, vector<1x9x16x16xf32>,
    } else {
    }
    %c0 = arith.constant 0 : index
    %c0_1 = arith.constant 0 : index
    %c0_2 = arith.constant 0 : index
    %3 = vector.load %arg2[%c0, %c0_1, %c0_2] : memref<2x16x16xf32, #tpu.memory_space<vmem>>, vector<2x16x16xf32>
    %4 = vector.extract_strided_slice %3 {offsets = [0, 0, 1], sizes = [2, 16, 15], strides = [1, 1, 1]} : vector<2x16x16xf32> to vector<2x16x15xf32>
    %5 = vector.extract_strided_slice %3 {offsets = [0, 0, 0], sizes = [2, 16, 1], strides = [1, 1, 1]} : vector<2x16x16xf32> to vector<2x16x1xf32>
    %6 = tpu.concatenate %4, %5 in 2 : vector<2x16x15xf32>, vector<2x16x1xf32> -> vector<2x16x16xf32>
    %7 = vector.extract_strided_slice %3 {offsets = [0, 1, 0], sizes = [2, 15, 16], strides = [1, 1, 1]} : vector<2x16x16xf32> to vector<2x15x16xf32>
    %8 = vector.extract_strided_slice %3 {offsets = [0, 0, 0], sizes = [2, 1, 16], strides = [1, 1, 1]} : vector<2x16x16xf32> to vector<2x1x16xf32>
    %9 = tpu.concatenate %7, %8 in 1 : vector<2x15x16xf32>, vector<2x1x16xf32> -> vector<2x16x16xf32>
    %10 = vector.extract_strided_slice %9 {offsets = [0, 0, 1], sizes = [2, 16, 15], strides = [1, 1, 1]} : vector<2x16x16xf32> to vector<2x16x15xf32>
    %11 = vector.extract_strided_slice %9 {offsets = [0, 0, 0], sizes = [2, 16, 1], strides = [1, 1, 1]} : vector<2x16x16xf32> to vector<2x16x1xf32>
    %12 = tpu.concatenate %10, %11 in 2 : vector<2x16x15xf32>, vector<2x16x1xf32> -> vector<2x16x16xf32>
    %13 = tpu.iota {dimensions = array<i32: 1>} : vector<2x16x16xi32>
    %14 = tpu.iota {dimensions = array<i32: 2>} : vector<2x16x16xi32>
    %c15_i32 = arith.constant 15 : i32
    %15 = vector.broadcast %c15_i32 : i32 to vector<2x16x16xi32>
    %16 = arith.cmpi slt, %13, %15 : vector<2x16x16xi32>
    %c15_i32_3 = arith.constant 15 : i32
    %17 = vector.broadcast %c15_i32_3 : i32 to vector<2x16x16xi32>
    %18 = arith.cmpi slt, %14, %17 : vector<2x16x16xi32>
    %19 = arith.andi %16, %18 : vector<2x16x16xi1>
    %cst = arith.constant 0.000000e+00 : f32
    %20 = vector.broadcast %cst : f32 to vector<2x16x16xf32>
    %21 = arith.subf %3, %6 : vector<2x16x16xf32>
    %22 = arith.select %18, %21, %20 : vector<2x16x16xi1>, vector<2x16x16xf32>
    %c0_4 = arith.constant 0 : index
    %c0_5 = arith.constant 0 : index
    %c0_6 = arith.constant 0 : index
    %c0_7 = arith.constant 0 : index
    %23 = vector.load %arg3[%c0_4, %c0_5, %c0_6, %c0_7] : memref<1x9x16x16xf32, #tpu.memory_space<vmem>>, vector<1x1x16x16xf32>
    %24 = vector.shape_cast %23 : vector<1x1x16x16xf32> to vector<16x16xf32>
    %25 = arith.mulf %22, %22 : vector<2x16x16xf32>
    %cst_8 = arith.constant dense<0.000000e+00> : vector<16x16xf32>
    %26 = vector.multi_reduction <add>, %25, %cst_8 [0] : vector<2x16x16xf32> to vector<16x16xf32>
    %27 = arith.addf %24, %26 : vector<16x16xf32>
    %c0_9 = arith.constant 0 : index
    %c0_10 = arith.constant 0 : index
    %c0_11 = arith.constant 0 : index
    %c0_12 = arith.constant 0 : index
    %28 = vector.load %arg3[%c0_9, %c0_10, %c0_11, %c0_12] : memref<1x9x16x16xf32, #tpu.memory_space<vmem>>, vector<1x1x16x16xf32>
    %29 = vector.shape_cast %28 : vector<1x1x16x16xf32> to vector<16x16xf32>
    %30 = vector.shape_cast %27 : vector<16x16xf32> to vector<1x1x16x16xf32>
    tpu.vector_store %arg3[%c0_9, %c0_10, %c0_11, %c0_12], %30 {strides = array<i32>} : memref<1x9x16x16xf32, #tpu.memory_space<vmem>>, vector<1x1x16x16xf32>,
    %c0_13 = arith.constant 0 : index
    %c4 = arith.constant 4 : index
    %c0_14 = arith.constant 0 : index
    %c0_15 = arith.constant 0 : index
    %31 = vector.load %arg3[%c0_13, %c4, %c0_14, %c0_15] : memref<1x9x16x16xf32, #tpu.memory_space<vmem>>, vector<1x1x16x16xf32>
    %32 = vector.shape_cast %31 : vector<1x1x16x16xf32> to vector<16x16xf32>
    %33 = math.absf %22 : vector<2x16x16xf32>
    %cst_16 = arith.constant dense<0.000000e+00> : vector<16x16xf32>
    %34 = vector.multi_reduction <add>, %33, %cst_16 [0] : vector<2x16x16xf32> to vector<16x16xf32>
    %35 = arith.addf %32, %34 : vector<16x16xf32>
    %c0_17 = arith.constant 0 : index
    %c4_18 = arith.constant 4 : index
    %c0_19 = arith.constant 0 : index
    %c0_20 = arith.constant 0 : index
    %36 = vector.load %arg3[%c0_17, %c4_18, %c0_19, %c0_20] : memref<1x9x16x16xf32, #tpu.memory_space<vmem>>, vector<1x1x16x16xf32>
    %37 = vector.shape_cast %36 : vector<1x1x16x16xf32> to vector<16x16xf32>
    %38 = vector.shape_cast %35 : vector<16x16xf32> to vector<1x1x16x16xf32>
    tpu.vector_store %arg3[%c0_17, %c4_18, %c0_19, %c0_20], %38 {strides = array<i32>} : memref<1x9x16x16xf32, #tpu.memory_space<vmem>>, vector<1x1x16x16xf32>,
    %39 = arith.subf %3, %9 : vector<2x16x16xf32>
    %40 = arith.select %16, %39, %20 : vector<2x16x16xi1>, vector<2x16x16xf32>
    %c0_21 = arith.constant 0 : index
    %c1 = arith.constant 1 : index
    %c0_22 = arith.constant 0 : index
    %c0_23 = arith.constant 0 : index
    %41 = vector.load %arg3[%c0_21, %c1, %c0_22, %c0_23] : memref<1x9x16x16xf32, #tpu.memory_space<vmem>>, vector<1x1x16x16xf32>
    %42 = vector.shape_cast %41 : vector<1x1x16x16xf32> to vector<16x16xf32>
    %43 = arith.mulf %40, %40 : vector<2x16x16xf32>
    %cst_24 = arith.constant dense<0.000000e+00> : vector<16x16xf32>
    %44 = vector.multi_reduction <add>, %43, %cst_24 [0] : vector<2x16x16xf32> to vector<16x16xf32>
    %45 = arith.addf %42, %44 : vector<16x16xf32>
    %c0_25 = arith.constant 0 : index
    %c1_26 = arith.constant 1 : index
    %c0_27 = arith.constant 0 : index
    %c0_28 = arith.constant 0 : index
    %46 = vector.load %arg3[%c0_25, %c1_26, %c0_27, %c0_28] : memref<1x9x16x16xf32, #tpu.memory_space<vmem>>, vector<1x1x16x16xf32>
    %47 = vector.shape_cast %46 : vector<1x1x16x16xf32> to vector<16x16xf32>
    %48 = vector.shape_cast %45 : vector<16x16xf32> to vector<1x1x16x16xf32>
    tpu.vector_store %arg3[%c0_25, %c1_26, %c0_27, %c0_28], %48 {strides = array<i32>} : memref<1x9x16x16xf32, #tpu.memory_space<vmem>>, vector<1x1x16x16xf32>,
    %c0_29 = arith.constant 0 : index
    %c5 = arith.constant 5 : index
    %c0_30 = arith.constant 0 : index
    %c0_31 = arith.constant 0 : index
    %49 = vector.load %arg3[%c0_29, %c5, %c0_30, %c0_31] : memref<1x9x16x16xf32, #tpu.memory_space<vmem>>, vector<1x1x16x16xf32>
    %50 = vector.shape_cast %49 : vector<1x1x16x16xf32> to vector<16x16xf32>
    %51 = math.absf %40 : vector<2x16x16xf32>
    %cst_32 = arith.constant dense<0.000000e+00> : vector<16x16xf32>
    %52 = vector.multi_reduction <add>, %51, %cst_32 [0] : vector<2x16x16xf32> to vector<16x16xf32>
    %53 = arith.addf %50, %52 : vector<16x16xf32>
    %c0_33 = arith.constant 0 : index
    %c5_34 = arith.constant 5 : index
    %c0_35 = arith.constant 0 : index
    %c0_36 = arith.constant 0 : index
    %54 = vector.load %arg3[%c0_33, %c5_34, %c0_35, %c0_36] : memref<1x9x16x16xf32, #tpu.memory_space<vmem>>, vector<1x1x16x16xf32>
    %55 = vector.shape_cast %54 : vector<1x1x16x16xf32> to vector<16x16xf32>
    %56 = vector.shape_cast %53 : vector<16x16xf32> to vector<1x1x16x16xf32>
    tpu.vector_store %arg3[%c0_33, %c5_34, %c0_35, %c0_36], %56 {strides = array<i32>} : memref<1x9x16x16xf32, #tpu.memory_space<vmem>>, vector<1x1x16x16xf32>,
    %57 = arith.subf %9, %6 : vector<2x16x16xf32>
    %58 = arith.select %19, %57, %20 : vector<2x16x16xi1>, vector<2x16x16xf32>
    %c0_37 = arith.constant 0 : index
    %c2 = arith.constant 2 : index
    %c0_38 = arith.constant 0 : index
    %c0_39 = arith.constant 0 : index
    %59 = vector.load %arg3[%c0_37, %c2, %c0_38, %c0_39] : memref<1x9x16x16xf32, #tpu.memory_space<vmem>>, vector<1x1x16x16xf32>
    %60 = vector.shape_cast %59 : vector<1x1x16x16xf32> to vector<16x16xf32>
    %61 = arith.mulf %58, %58 : vector<2x16x16xf32>
    %cst_40 = arith.constant dense<0.000000e+00> : vector<16x16xf32>
    %62 = vector.multi_reduction <add>, %61, %cst_40 [0] : vector<2x16x16xf32> to vector<16x16xf32>
    %63 = arith.addf %60, %62 : vector<16x16xf32>
    %c0_41 = arith.constant 0 : index
    %c2_42 = arith.constant 2 : index
    %c0_43 = arith.constant 0 : index
    %c0_44 = arith.constant 0 : index
    %64 = vector.load %arg3[%c0_41, %c2_42, %c0_43, %c0_44] : memref<1x9x16x16xf32, #tpu.memory_space<vmem>>, vector<1x1x16x16xf32>
    %65 = vector.shape_cast %64 : vector<1x1x16x16xf32> to vector<16x16xf32>
    %66 = vector.shape_cast %63 : vector<16x16xf32> to vector<1x1x16x16xf32>
    tpu.vector_store %arg3[%c0_41, %c2_42, %c0_43, %c0_44], %66 {strides = array<i32>} : memref<1x9x16x16xf32, #tpu.memory_space<vmem>>, vector<1x1x16x16xf32>,
    %c0_45 = arith.constant 0 : index
    %c6 = arith.constant 6 : index
    %c0_46 = arith.constant 0 : index
    %c0_47 = arith.constant 0 : index
    %67 = vector.load %arg3[%c0_45, %c6, %c0_46, %c0_47] : memref<1x9x16x16xf32, #tpu.memory_space<vmem>>, vector<1x1x16x16xf32>
    %68 = vector.shape_cast %67 : vector<1x1x16x16xf32> to vector<16x16xf32>
    %69 = math.absf %58 : vector<2x16x16xf32>
    %cst_48 = arith.constant dense<0.000000e+00> : vector<16x16xf32>
    %70 = vector.multi_reduction <add>, %69, %cst_48 [0] : vector<2x16x16xf32> to vector<16x16xf32>
    %71 = arith.addf %68, %70 : vector<16x16xf32>
    %c0_49 = arith.constant 0 : index
    %c6_50 = arith.constant 6 : index
    %c0_51 = arith.constant 0 : index
    %c0_52 = arith.constant 0 : index
    %72 = vector.load %arg3[%c0_49, %c6_50, %c0_51, %c0_52] : memref<1x9x16x16xf32, #tpu.memory_space<vmem>>, vector<1x1x16x16xf32>
    %73 = vector.shape_cast %72 : vector<1x1x16x16xf32> to vector<16x16xf32>
    %74 = vector.shape_cast %71 : vector<16x16xf32> to vector<1x1x16x16xf32>
    tpu.vector_store %arg3[%c0_49, %c6_50, %c0_51, %c0_52], %74 {strides = array<i32>} : memref<1x9x16x16xf32, #tpu.memory_space<vmem>>, vector<1x1x16x16xf32>,
    %75 = arith.subf %3, %12 : vector<2x16x16xf32>
    %76 = arith.select %19, %75, %20 : vector<2x16x16xi1>, vector<2x16x16xf32>
    %c0_53 = arith.constant 0 : index
    %c3 = arith.constant 3 : index
    %c0_54 = arith.constant 0 : index
    %c0_55 = arith.constant 0 : index
    %77 = vector.load %arg3[%c0_53, %c3, %c0_54, %c0_55] : memref<1x9x16x16xf32, #tpu.memory_space<vmem>>, vector<1x1x16x16xf32>
    %78 = vector.shape_cast %77 : vector<1x1x16x16xf32> to vector<16x16xf32>
    %79 = arith.mulf %76, %76 : vector<2x16x16xf32>
    %cst_56 = arith.constant dense<0.000000e+00> : vector<16x16xf32>
    %80 = vector.multi_reduction <add>, %79, %cst_56 [0] : vector<2x16x16xf32> to vector<16x16xf32>
    %81 = arith.addf %78, %80 : vector<16x16xf32>
    %c0_57 = arith.constant 0 : index
    %c3_58 = arith.constant 3 : index
    %c0_59 = arith.constant 0 : index
    %c0_60 = arith.constant 0 : index
    %82 = vector.load %arg3[%c0_57, %c3_58, %c0_59, %c0_60] : memref<1x9x16x16xf32, #tpu.memory_space<vmem>>, vector<1x1x16x16xf32>
    %83 = vector.shape_cast %82 : vector<1x1x16x16xf32> to vector<16x16xf32>
    %84 = vector.shape_cast %81 : vector<16x16xf32> to vector<1x1x16x16xf32>
    tpu.vector_store %arg3[%c0_57, %c3_58, %c0_59, %c0_60], %84 {strides = array<i32>} : memref<1x9x16x16xf32, #tpu.memory_space<vmem>>, vector<1x1x16x16xf32>,
    %c0_61 = arith.constant 0 : index
    %c7 = arith.constant 7 : index
    %c0_62 = arith.constant 0 : index
    %c0_63 = arith.constant 0 : index
    %85 = vector.load %arg3[%c0_61, %c7, %c0_62, %c0_63] : memref<1x9x16x16xf32, #tpu.memory_space<vmem>>, vector<1x1x16x16xf32>
    %86 = vector.shape_cast %85 : vector<1x1x16x16xf32> to vector<16x16xf32>
    %87 = math.absf %76 : vector<2x16x16xf32>
    %cst_64 = arith.constant dense<0.000000e+00> : vector<16x16xf32>
    %88 = vector.multi_reduction <add>, %87, %cst_64 [0] : vector<2x16x16xf32> to vector<16x16xf32>
    %89 = arith.addf %86, %88 : vector<16x16xf32>
    %c0_65 = arith.constant 0 : index
    %c7_66 = arith.constant 7 : index
    %c0_67 = arith.constant 0 : index
    %c0_68 = arith.constant 0 : index
    %90 = vector.load %arg3[%c0_65, %c7_66, %c0_67, %c0_68] : memref<1x9x16x16xf32, #tpu.memory_space<vmem>>, vector<1x1x16x16xf32>
    %91 = vector.shape_cast %90 : vector<1x1x16x16xf32> to vector<16x16xf32>
    %92 = vector.shape_cast %89 : vector<16x16xf32> to vector<1x1x16x16xf32>
    tpu.vector_store %arg3[%c0_65, %c7_66, %c0_67, %c0_68], %92 {strides = array<i32>} : memref<1x9x16x16xf32, #tpu.memory_space<vmem>>, vector<1x1x16x16xf32>,
    %c0_69 = arith.constant 0 : index
    %c8 = arith.constant 8 : index
    %c0_70 = arith.constant 0 : index
    %c0_71 = arith.constant 0 : index
    %93 = vector.load %arg3[%c0_69, %c8, %c0_70, %c0_71] : memref<1x9x16x16xf32, #tpu.memory_space<vmem>>, vector<1x1x16x16xf32>
    %94 = vector.shape_cast %93 : vector<1x1x16x16xf32> to vector<16x16xf32>
    %95 = arith.mulf %3, %3 : vector<2x16x16xf32>
    %cst_72 = arith.constant dense<0.000000e+00> : vector<16x16xf32>
    %96 = vector.multi_reduction <add>, %95, %cst_72 [0] : vector<2x16x16xf32> to vector<16x16xf32>
    %97 = arith.addf %94, %96 : vector<16x16xf32>
    %c0_73 = arith.constant 0 : index
    %c8_74 = arith.constant 8 : index
    %c0_75 = arith.constant 0 : index
    %c0_76 = arith.constant 0 : index
    %98 = vector.load %arg3[%c0_73, %c8_74, %c0_75, %c0_76] : memref<1x9x16x16xf32, #tpu.memory_space<vmem>>, vector<1x1x16x16xf32>
    %99 = vector.shape_cast %98 : vector<1x1x16x16xf32> to vector<16x16xf32>
    %100 = vector.shape_cast %97 : vector<16x16xf32> to vector<1x1x16x16xf32>
    tpu.vector_store %arg3[%c0_73, %c8_74, %c0_75, %c0_76], %100 {strides = array<i32>} : memref<1x9x16x16xf32, #tpu.memory_space<vmem>>, vector<1x1x16x16xf32>,
    return
  }
  func.func @transform_0(%arg0: i32, %arg1: i32) -> (i32, i32, i32) {
    %c2_i32 = arith.constant 2 : i32
    %0 = arith.muli %arg0, %c2_i32 : i32
    %1 = arith.addi %0, %arg1 : i32
    %c0_i32 = arith.constant 0 : i32
    %c0_i32_0 = arith.constant 0 : i32
    %c0_i32_1 = arith.constant 0 : i32
    return %1, %c0_i32, %c0_i32_0 : i32, i32, i32
  }
  func.func @transform_1(%arg0: i32, %arg1: i32) -> (i32, i32, i32, i32) {
    %c0_i32 = arith.constant 0 : i32
    %c0_i32_0 = arith.constant 0 : i32
    %c0_i32_1 = arith.constant 0 : i32
    %c0_i32_2 = arith.constant 0 : i32
    return %arg0, %c0_i32, %c0_i32_0, %c0_i32_1 : i32, i32, i32, i32
  }
}

</mosaic_0001>

<bundles_post_ra>
// kernel: image_prompt_loss.1
= control target key start
LH: loop header
LB: loop body
LE: loop exit
PB: predicated region body
PF: predicated region fallthrough
CT: control target
= control target key end

     0   :  { %6 = vsyncpa [#allocation3], 0  ;;  %s1165_s0 = inlined_call_operand.hbm [shape: f32[8,16,16], index: 0, kind: input, shape index: {}]   ;;  %s1166_s1 = inlined_call_operand.vmem [shape: f32[2,9,16,16], index: 1, kind: output, shape index: {}]  }
   0x1   :  { %8 = vsyncpa [#allocation3 + $0x1], 0  ;;  %s779_s6 = smov 0   ;;  %s781_s7 = smov 0  }
   0x2   :  { %s783_s8 = smov 0   ;;  %s785_s9 = smov 0  }
   0x3   :  { %s787_s10 = smov 0   ;;  %s789_s11 = smov 0  }
   0x4   :  { %s791_s12 = smov 0   ;;  %s793_s13 = smov 0  }
   0x5 LB: > { %s539_s14 = sadd.s32 4294967295, %s761_s13   ;;  %s23_s15 = sadd.s32 1, %s753_s11  ;;  %s761_s13 = sphi %s793_s13, %s14_s13   ;;  %s757_s12 = sphi %s791_s12, %s1178_s12   ;;  %s753_s11 = sphi %s789_s11, %s1177_s11   ;;  %s749_s10 = sphi %s787_s10, %s1176_s10   ;;  %s745_s9 = sphi %s785_s9, %s1175_s9   ;;  %s741_s8 = sphi %s783_s8, %s1174_s8   ;;  %s737_s7 = sphi %s781_s7, %s1173_s7   ;;  %s733_s6 = sphi %s779_s6, %s1172_s6  }
   0x6   : > { %p24_p0 = scmp.ge.s32.totalorder %s23_s15, 2  ;;  %s26_s16 = sadd.s32 1, %s757_s12 }
   0x7   : > { %s541_s17 = sshll.u32 %s757_s12, 1  ;;  %s37_s18 = sadd.s32 1, %s741_s8 }
   0x8   : > { %s1180_s15 = smov (%p24_p0, %s23_s15), 0  ;;  %s1182_s16 = smov (!%p24_p0, %s26_s16), %s757_s12 }
   0x9   : > { %s31_s19 = sadd.s32 %s753_s11, %s541_s17  ;;  %p44_p1 = scmp.ne.s32.totalorder %s741_s8, %s737_s7 }
   0xa   : > { %p28_p2 = scmp.ge.s32.totalorder %s1182_s16, 2  ;;  %p45_p3 = scmp.eq.s32.totalorder %s761_s13, 0 }
   0xb   : > { %p50_p4 = scmp.ne.s32.totalorder %s737_s7, %s733_s6  ;;  %p51_p5 = scmp.eq.s32.totalorder %s539_s14, 0 }
   0xc   : > { %s1184_s16 = smov (%p28_p2, %s1182_s16), 0  ;;  %p832_p6 = por %p45_p3, %p44_p1 }
   0xd   : > { %p836_p7 = por %p51_p5, %p50_p4  ;;  %s542_s22 = sshll.u32 %s1184_s16, 1 }
   0xe   : > { %s33_s23 = sadd.s32 %s542_s22, %s1180_s15  ;;  %p597_p8 = scmp.lt.s32.totalorder %s761_s13, 4 }
   0xf   : > { %s34_s24 = ssub.s32 %s31_s19, %s33_s23  ;;  %s100_s25 = sand.u32 1, %s741_s8  }
  0x10   : > { %p35_p9 = scmp.eq.s32.totalorder %s34_s24, 0  ;;  %s545_s26 = sshll.u32 %s100_s25, 5 }
  0x11   : > { %s589_s27 = sshll.u32 %s31_s19, 9  ;;  %s104_s3 = scalar_lea.vmem [#allocation2], %s545_s26 }
  0x12   : > { %s845_s28 = scalar_select %p35_p9, %s741_s8, %s37_s18  }
  0x13   : > { %s113_s2 = scalar_lea.hbm %s1165_s0, %s589_s27  ;;  %s114_s4 = sshll.u32 %s104_s3, 4  ;;  %s115_s4 = int_to_ptr.vmem [resolvable:$true] %s114_s4 }
  0x14   : > { %p852_p10 = pnand %p597_p8, %p832_p6  ;;  %s101_s6 = scalar_lea.sflag [#allocation3], %s100_s25 }
  0x15   : > { %s680_s14 = scalar_lea.vmem %s115_s4, 512  ;;  %s763_s17 = smov [#allocation2]  }
  0x16   : > { %p669_p11 = pneg %p852_p10  ;;  %p681_p12 = scmp.ne.s32.totalorder %s115_s4, %s680_s14 }
  0x17   : > { %s685_s18 = sshll.u32 %s763_s17, 4  ;;  %s686_s18 = int_to_ptr.vmem [resolvable:$false] %s685_s18 }
  0x18   : > { %p683_p13 = pnand %p681_p12, %p669_p11  ;;  %s687_s19 = scalar_lea.vmem %s686_s18, 1024 }
  0x19   : > { %p688_p1 = scmp.lt.s32.totalorder %s115_s4, %s686_s18  ;;  %p689_p2 = scmp.lt.s32.totalorder %s687_s19, %s680_s14 }
  0x1a   : > { %p684_p0 = pneg %p683_p13 }
  0x1b   : > { %p690_p3 = por %p689_p2, %p688_p1 }
  0x1d   : > { %p691_p4 = pnand %p690_p3, %p684_p0 }
  0x1f   : > { %694 = shalt.err (!%p691_p4)
}
  0x20   : > { %s764_s20 = smov 128   ;;  %s765_s22 = smov 8  }
  0x21   : > { %596 = dma.hbm_to_vmem [thread:$0]  (!%p852_p10), %s113_s2, 512, %s115_s4, %s101_s6, %s764_s20, %s764_s20, %s765_s22  }
  0x22   : > { %p550_p5 = scmp.ge.s32.totalorder %s761_s13, 1  ;;  %p122_p6 = scmp.lt.s32.totalorder %s761_s13, 5 }
  0x24   : > { %p123_p8 = pnand %p550_p5, %p122_p6 }
  0x25   : > { %s128_s23 = sand.u32 (!%p123_p8), 1, %s737_s7  }
  0x26   : > { %126 = sbr.rel (%p123_p8) target bundleno = 219 (0xdb), region = 24  ;;  %s551_s24 = sshll.u32 (!%p123_p8), %s128_s23, 5 }
  0x27   : > { %s129_s25 = scalar_lea.sflag (!%p123_p8), [#allocation3], %s128_s23  ;;  %s863_s26 = scalar_lea.vmem (!%p123_p8), [#allocation2], %s551_s24 }
  0x2b   : > { %728 = dma.done.wait (%p836_p7), %s129_s25, 512  }
  0x2c   : > { %730 = vsyncadd (%p836_p7), %s129_s25, 4294966784  ;;  %p154_p9 = scmp.lt.s32.totalorder %s749_s10, 1  ;;  %p553_p10 = scmp.ne.s32.totalorder %s745_s9, 0 }
  0x2e   : > { %s1186_s10 = smov (!%p154_p9, %s749_s10), 1  ;;  %162 = sbr.rel (%p553_p10) target bundleno = 61 (0x3d), region = 32 }
  0x2f   : > { %s590_s27 = smul.u32 144, %s1186_s10 }
  0x31   : > { %s874_s2 = scalar_lea.vmem %s1166_s1, %s590_s27 }
  0x33   : > { %vm163_vm0 = vcmask 130048   ;;  %v766_v0 = vmov 0.0  }
  0x34   : > { %164 = vst.msk [vmem:[%s874_s2] sm:$0xff] %vm163_vm0, %v766_v0  ;;  %165 = vst.msk [vmem:[%s874_s2 + $0x8] sm:$0xff] %vm163_vm0, %v766_v0 }
  0x35   : > { %166 = vst.msk [vmem:[%s874_s2 + $0x10] sm:$0xff] %vm163_vm0, %v766_v0  ;;  %167 = vst.msk [vmem:[%s874_s2 + $0x18] sm:$0xff] %vm163_vm0, %v766_v0 }
  0x36   : > { %168 = vst.msk [vmem:[%s874_s2 + $0x20] sm:$0xff] %vm163_vm0, %v766_v0  ;;  %169 = vst.msk [vmem:[%s874_s2 + $0x28] sm:$0xff] %vm163_vm0, %v766_v0 }
  0x37   : > { %170 = vst.msk [vmem:[%s874_s2 + $0x30] sm:$0xff] %vm163_vm0, %v766_v0  ;;  %171 = vst.msk [vmem:[%s874_s2 + $0x38] sm:$0xff] %vm163_vm0, %v766_v0 }
  0x38   : > { %172 = vst.msk [vmem:[%s874_s2 + $0x40] sm:$0xff] %vm163_vm0, %v766_v0  ;;  %173 = vst.msk [vmem:[%s874_s2 + $0x48] sm:$0xff] %vm163_vm0, %v766_v0 }
  0x39   : > { %174 = vst.msk [vmem:[%s874_s2 + $0x50] sm:$0xff] %vm163_vm0, %v766_v0  ;;  %175 = vst.msk [vmem:[%s874_s2 + $0x58] sm:$0xff] %vm163_vm0, %v766_v0 }
  0x3a   : > { %176 = vst.msk [vmem:[%s874_s2 + $0x60] sm:$0xff] %vm163_vm0, %v766_v0  ;;  %177 = vst.msk [vmem:[%s874_s2 + $0x68] sm:$0xff] %vm163_vm0, %v766_v0 }
  0x3b   : > { %178 = vst.msk [vmem:[%s874_s2 + $0x70] sm:$0xff] %vm163_vm0, %v766_v0  ;;  %179 = vst.msk [vmem:[%s874_s2 + $0x78] sm:$0xff] %vm163_vm0, %v766_v0 }
  0x3c   : > { %180 = vst.msk [vmem:[%s874_s2 + $0x80] sm:$0xff] %vm163_vm0, %v766_v0  ;;  %181 = vst.msk [vmem:[%s874_s2 + $0x88] sm:$0xff] %vm163_vm0, %v766_v0 }
  0x3d PF: > { %v914_v1 = vld [vmem:[%s863_s26 + $0x10] sm:$0xff]  ;;  %vm288_vm1 = vcmask 130048   ;;  %v917_v2 = vld [vmem:[%s863_s26] sm:$0xff]  ;;  %v264_v3 = vlaneseq  ;;  %s767_s9 = smov 127   ;;  %v928_v6 = vld [vmem:[%s863_s26 + $0x18] sm:$0xff]  ;;  %vm219_vm2 = vcmask 1046528  }
  0x3e   : > { %194 = vrot.lane.b32.xlu1 %v914_v1, %s767_s9  ;;  %v447_v4 = vmul.f32 %v914_v1, %v914_v1  ;;  %190 = vrot.lane.b32.xlu0 %v917_v2, %s767_s9  ;;  %v445_v5 = vmul.f32 %v917_v2, %v917_v2  ;;  %v931_v7 = vld [vmem:[%s863_s26 + $0x8] sm:$0xff]  ;;  %v220_v8 = vrot.slane %v917_v2, 1  ;;  %v448_v9 = vmul.f32 %v928_v6, %v928_v6  ;;  %s768_s10 = smov 15   ;;  %v558_v50 = vld [vmem:[%s874_s2 + $0x10] sm:$0xff] }
  0x3f   : > { %v446_v10 = vmul.f32 %v931_v7, %v931_v7  ;;  %v221_v11 = vrot.slane %v931_v7, 1  ;;  %v265_v12 = vshrl.u32 %v264_v3, 7  ;;  %v942_v16 = vand.u32 127, %v264_v3  ;;  %v559_v54 = vld [vmem:[%s874_s2 + $0x18] sm:$0xff] }
  0x40   : > { %v450_v13 = vsel %vm288_vm1, %v447_v4, 0.0  ;;  %v449_v15 = vsel %vm288_vm1, %v445_v5, 0.0  ;;  %v223_v17 = vrot.slane %v914_v1, 1  ;;  %v453_v19 = vsel %vm288_vm1, %v448_v9, 0.0  ;;  %v562_v52 = vld [vmem:[%s874_s2 + $0x50] sm:$0xff]  ;;  %v563_v56 = vld [vmem:[%s874_s2 + $0x58] sm:$0xff] }
  0x41   : > { %v451_v18 = vadd.f32 %v450_v13, %v449_v15  ;;  %v452_v21 = vsel %vm288_vm1, %v446_v10, 0.0  ;;  %v949_v22 = vsel %vm219_vm2, %v221_v11, %v220_v8  ;;  %v266_v24 = vadd.s32 8, %v265_v12 }
  0x42   : > { %196 = vrot.lane.b32.xlu1 %v928_v6, %s767_s9  ;;  %v454_v23 = vadd.f32 %v453_v19, %v452_v21  ;;  %192 = vrot.lane.b32.xlu0 %v931_v7, %s767_s9  ;;  %vm271_vm3 = vcmp.lt.s32.totalorder %v942_v16, 15  ;;  %v317_v25 = vsub.f32 %v931_v7, %v949_v22  ;;  %v959_v27 = vsel %vm219_vm2, %v220_v8, %v221_v11  ;;  %v579_v34 = vld [vmem:[%s874_s2 + $0x78] sm:$0xff] }
  0x43   : > { %v582_v14 = vld [vmem:[%s874_s2 + $0x80] sm:$0xff]  ;;  %v583_v20 = vld [vmem:[%s874_s2 + $0x88] sm:$0xff]  ;;  %v224_v28 = vrot.slane %v928_v6, 1  ;;  %vm270_vm4 = vcmp.lt.s32.totalorder %v266_v24, 15  ;;  %v316_v30 = vsub.f32 %v917_v2, %v959_v27  ;;  %vm214_vm6 = vcmask 121856  }
  0x44   : > { %v455_v26 = vadd.f32 %v582_v14, %v451_v18  ;;  %v456_v29 = vadd.f32 %v583_v20, %v454_v23  ;;  %v321_v31 = vsel %vm270_vm4, %v317_v25, 0.0  ;;  %vm976_vm5 = vmand %vm270_vm4, %vm271_vm3 }
  0x45   : > { %v968_v32 = vsel %vm219_vm2, %v224_v28, %v223_v17  ;;  %v971_v33 = vsel %vm219_vm2, %v223_v17, %v224_v28  ;;  %v328_v35 = vmul.f32 %v321_v31, %v321_v31  ;;  %v345_v36 = vand.u32 2147483647, %v321_v31 }
  0x46   : > { %584 = vst.msk [vmem:[%s874_s2 + $0x80] sm:$0xff] %vm288_vm1, %v455_v26  ;;  %585 = vst.msk [vmem:[%s874_s2 + $0x88] sm:$0xff] %vm288_vm1, %v456_v29  ;;  %204 = vrot.lane.b32.xlu1 %v931_v7, %s768_s10  ;;  %202 = vrot.lane.b32.xlu0 %v917_v2, %s768_s10  ;;  %v327_v37 = vmul.f32 %v316_v30, %v316_v30  ;;  %v344_v38 = vand.u32 2147483647, %v316_v30  ;;  %v319_v39 = vsub.f32 %v928_v6, %v968_v32 }
  0x47   : > { %v318_v40 = vsub.f32 %v914_v1, %v971_v33  ;;  %v334_v46 = vsel %vm288_vm1, %v328_v35, 0.0  ;;  %v351_v47 = vsel %vm288_vm1, %v345_v36, 0.0 }
  0x48   : > { %v331_v41 = vsel %vm288_vm1, %v327_v37, 0.0  ;;  %v348_v42 = vsel %vm288_vm1, %v344_v38, 0.0  ;;  %v323_v43 = vsel %vm270_vm4, %v319_v39, 0.0 }
  0x49   : > { %v329_v44 = vmul.f32 %v318_v40, %v318_v40  ;;  %v346_v45 = vand.u32 2147483647, %v318_v40  ;;  %v330_v48 = vmul.f32 %v323_v43, %v323_v43  ;;  %v347_v49 = vand.u32 2147483647, %v323_v43 }
  0x4a   : > { %208 = vrot.lane.b32.xlu1 %v928_v6, %s768_s10  ;;  %206 = vrot.lane.b32.xlu0 %v914_v1, %s768_s10 }
  0x4b   : > { %v332_v51 = vsel %vm288_vm1, %v329_v44, 0.0  ;;  %v349_v53 = vsel %vm288_vm1, %v346_v45, 0.0  ;;  %v335_v55 = vsel %vm288_vm1, %v330_v48, 0.0  ;;  %v352_v57 = vsel %vm288_vm1, %v347_v49, 0.0 }
  0x4c   : > { %v333_v58 = vadd.f32 %v332_v51, %v331_v41  ;;  %v350_v59 = vadd.f32 %v349_v53, %v348_v42  ;;  %v336_v60 = vadd.f32 %v335_v55, %v334_v46  ;;  %v353_v61 = vadd.f32 %v352_v57, %v351_v47 }
  0x4e   : > { %238 = vrot.lane.b32.xlu1 %v949_v22, %s767_s9  ;;  %236 = vrot.lane.b32.xlu0 %v959_v27, %s767_s9  ;;  %v337_v62 = vadd.f32 %v558_v50, %v333_v58  ;;  %v354_v63 = vadd.f32 %v562_v52, %v350_v59  ;;  %v338_v0 = vadd.f32 %v559_v54, %v336_v60  ;;  %v283_v60 = vld [vmem:[%s874_s2 + $0x8] sm:$0xff] }
  0x4f   : > { %v355_v3 = vadd.f32 %v563_v56, %v353_v61  ;;  %v555_v61 = vld [vmem:[%s874_s2 + $0x48] sm:$0xff] }
  0x50   : > { %560 = vst.msk [vmem:[%s874_s2 + $0x10] sm:$0xff] %vm288_vm1, %v337_v62  ;;  %564 = vst.msk [vmem:[%s874_s2 + $0x50] sm:$0xff] %vm288_vm1, %v354_v63 }
  0x51   : > { %561 = vst.msk [vmem:[%s874_s2 + $0x18] sm:$0xff] %vm288_vm1, %v338_v0  ;;  %565 = vst.msk [vmem:[%s874_s2 + $0x58] sm:$0xff] %vm288_vm1, %v355_v3 }
  0x52   : > { %242 = vrot.lane.b32.xlu1 %v968_v32, %s767_s9  ;;  %240 = vrot.lane.b32.xlu0 %v971_v33, %s767_s9 }
  0x56   : > { %250 = vrot.lane.b32.xlu1 %v949_v22, %s768_s10  ;;  %248 = vrot.lane.b32.xlu0 %v959_v27, %s768_s10 }
  0x5a   : > { %254 = vrot.lane.b32.xlu1 %v968_v32, %s768_s10  ;;  %252 = vrot.lane.b32.xlu0 %v971_v33, %s768_s10 }
  0xb0   : > { %v195_v4 = vpop.permute.xlu1 %194  ;;  %v191_v5 = vpop.permute.xlu0 %190 }
  0xb4   : > { %v197_v8 = vpop.permute.xlu1 %196  ;;  %v193_v9 = vpop.permute.xlu0 %192 }
  0xb8   : > { %v205_v10 = vpop.permute.xlu1 %204  ;;  %v203_v11 = vpop.permute.xlu0 %202 }
  0xb9   : > { %v216_v12 = vsel %vm214_vm6, %v193_v9, %v205_v10  ;;  %v215_v13 = vsel %vm214_vm6, %v191_v5, %v203_v11  ;;  %v571_v5 = vld [vmem:[%s874_s2 + $0x68] sm:$0xff] }
  0xba   : > { %v275_v14 = vsub.f32 %v931_v7, %v216_v12  ;;  %v359_v15 = vsub.f32 %v949_v22, %v216_v12  ;;  %v274_v17 = vsub.f32 %v917_v2, %v215_v13  ;;  %v358_v18 = vsub.f32 %v959_v27, %v215_v13 }
  0xbc   : > { %v279_v19 = vsel %vm271_vm3, %v275_v14, 0.0  ;;  %v363_v20 = vsel %vm976_vm5, %v359_v15, 0.0  ;;  %v278_v21 = vsel %vm271_vm3, %v274_v17, 0.0  ;;  %v362_v23 = vsel %vm271_vm3, %v358_v18, 0.0  ;;  %v209_v24 = vpop.permute.xlu1 %208  ;;  %v207_v25 = vpop.permute.xlu0 %206 }
  0xbd   : > { %v285_v26 = vmul.f32 %v279_v19, %v279_v19  ;;  %v303_v22 = vand.u32 2147483647, %v279_v19  ;;  %v370_v28 = vmul.f32 %v363_v20, %v363_v20  ;;  %v387_v29 = vand.u32 2147483647, %v363_v20  ;;  %v282_v19 = vld [vmem:[%s874_s2] sm:$0xff] }
  0xbe   : > { %v284_v30 = vmul.f32 %v278_v21, %v278_v21  ;;  %v302_v27 = vand.u32 2147483647, %v278_v21  ;;  %v369_v31 = vmul.f32 %v362_v23, %v362_v23  ;;  %v386_v35 = vand.u32 2147483647, %v362_v23 }
  0xbf   : > { %v292_v36 = vsel %vm288_vm1, %v285_v26, 0.0  ;;  %v309_v37 = vsel %vm288_vm1, %v303_v22, 0.0  ;;  %v376_v40 = vsel %vm288_vm1, %v370_v28, 0.0  ;;  %v393_v41 = vsel %vm288_vm1, %v387_v29, 0.0  ;;  %v554_v29 = vld [vmem:[%s874_s2 + $0x40] sm:$0xff] }
  0xc0   : > { %v1047_v38 = vpop.permute.xlu1 %238  ;;  %v1049_v39 = vpop.permute.xlu0 %236  ;;  %v218_v42 = vsel %vm214_vm6, %v197_v8, %v209_v24  ;;  %v217_v43 = vsel %vm214_vm6, %v195_v4, %v207_v25  ;;  %v289_v48 = vsel %vm288_vm1, %v284_v30, 0.0  ;;  %v306_v49 = vsel %vm288_vm1, %v302_v27, 0.0  ;;  %v567_v4 = vld [vmem:[%s874_s2 + $0x28] sm:$0xff]  ;;  %v566_v30 = vld [vmem:[%s874_s2 + $0x20] sm:$0xff] }
  0xc1   : > { %v277_v44 = vsub.f32 %v928_v6, %v218_v42  ;;  %v361_v45 = vsub.f32 %v968_v32, %v218_v42  ;;  %v276_v46 = vsub.f32 %v914_v1, %v217_v43  ;;  %v360_v47 = vsub.f32 %v971_v33, %v217_v43  ;;  %v570_v27 = vld [vmem:[%s874_s2 + $0x60] sm:$0xff] }
  0xc2   : > { %v373_v50 = vsel %vm288_vm1, %v369_v31, 0.0  ;;  %v390_v51 = vsel %vm288_vm1, %v386_v35, 0.0 }
  0xc3   : > { %v281_v52 = vsel %vm271_vm3, %v277_v44, 0.0  ;;  %v365_v32 = vsel %vm976_vm5, %v361_v45, 0.0  ;;  %v280_v33 = vsel %vm271_vm3, %v276_v46, 0.0  ;;  %v364_v53 = vsel %vm271_vm3, %v360_v47, 0.0 }
  0xc4   : > { %v243_v54 = vpop.permute.xlu1 %242  ;;  %v241_v55 = vpop.permute.xlu0 %240  ;;  %v287_v56 = vmul.f32 %v281_v52, %v281_v52  ;;  %v305_v57 = vand.u32 2147483647, %v281_v52  ;;  %v372_v58 = vmul.f32 %v365_v32, %v365_v32  ;;  %v389_v59 = vand.u32 2147483647, %v365_v32 }
  0xc5   : > { %v286_v62 = vmul.f32 %v280_v33, %v280_v33  ;;  %v304_v63 = vand.u32 2147483647, %v280_v33  ;;  %v371_v0 = vmul.f32 %v364_v53, %v364_v53  ;;  %v388_v3 = vand.u32 2147483647, %v364_v53 }
  0xc6   : > { %v293_v8 = vsel %vm288_vm1, %v287_v56, 0.0  ;;  %v310_v9 = vsel %vm288_vm1, %v305_v57, 0.0  ;;  %v377_v10 = vsel %vm288_vm1, %v372_v58, 0.0  ;;  %v394_v11 = vsel %vm288_vm1, %v389_v59, 0.0 }
  0xc7   : > { %v294_v12 = vadd.f32 %v293_v8, %v292_v36  ;;  %v311_v13 = vadd.f32 %v310_v9, %v309_v37  ;;  %v378_v14 = vadd.f32 %v377_v10, %v376_v40  ;;  %v395_v15 = vadd.f32 %v394_v11, %v393_v41 }
  0xc8   : > { %v251_v17 = vpop.permute.xlu1 %250  ;;  %v249_v18 = vpop.permute.xlu0 %248  ;;  %v290_v20 = vsel %vm288_vm1, %v286_v62, 0.0  ;;  %v307_v21 = vsel %vm288_vm1, %v304_v63, 0.0  ;;  %v374_v23 = vsel %vm288_vm1, %v371_v0, 0.0  ;;  %v391_v24 = vsel %vm288_vm1, %v388_v3, 0.0  ;;  %v575_v62 = vld [vmem:[%s874_s2 + $0x38] sm:$0xff]  ;;  %v574_v0 = vld [vmem:[%s874_s2 + $0x30] sm:$0xff] }
  0xc9   : > { %v296_v25 = vadd.f32 %v294_v12, %v283_v60  ;;  %v313_v26 = vadd.f32 %v555_v61, %v311_v13  ;;  %v380_v22 = vadd.f32 %v567_v4, %v378_v14  ;;  %v397_v28 = vadd.f32 %v571_v5, %v395_v15  ;;  %v578_v3 = vld [vmem:[%s874_s2 + $0x70] sm:$0xff] }
  0xca   : > { %v291_v31 = vadd.f32 %v290_v20, %v289_v48  ;;  %v308_v35 = vadd.f32 %v307_v21, %v306_v49  ;;  %v375_v36 = vadd.f32 %v374_v23, %v373_v50  ;;  %v392_v37 = vadd.f32 %v391_v24, %v390_v51 }
  0xcb   : > { %298 = vst.msk [vmem:[%s874_s2 + $0x8] sm:$0xff] %vm288_vm1, %v296_v25  ;;  %557 = vst.msk [vmem:[%s874_s2 + $0x48] sm:$0xff] %vm288_vm1, %v313_v26  ;;  %v261_v40 = vsel %vm214_vm6, %v1047_v38, %v251_v17  ;;  %v260_v41 = vsel %vm214_vm6, %v1049_v39, %v249_v18 }
  0xcc   : > { %569 = vst.msk [vmem:[%s874_s2 + $0x28] sm:$0xff] %vm288_vm1, %v380_v22  ;;  %573 = vst.msk [vmem:[%s874_s2 + $0x68] sm:$0xff] %vm288_vm1, %v397_v28  ;;  %v255_v42 = vpop.permute.xlu1 %254  ;;  %v253_v43 = vpop.permute.xlu0 %252  ;;  %v295_v44 = vadd.f32 %v291_v31, %v282_v19  ;;  %v312_v45 = vadd.f32 %v554_v29, %v308_v35  ;;  %v379_v46 = vadd.f32 %v566_v30, %v375_v36 }
  0xcd   : > { %v396_v47 = vadd.f32 %v570_v27, %v392_v37  ;;  %v401_v48 = vsub.f32 %v931_v7, %v261_v40  ;;  %v400_v49 = vsub.f32 %v917_v2, %v260_v41  ;;  %v263_v50 = vsel %vm214_vm6, %v243_v54, %v255_v42 }
  0xce   : > { %v262_v51 = vsel %vm214_vm6, %v241_v55, %v253_v43  ;;  %297 = vst.msk [vmem:[%s874_s2] sm:$0xff] %vm288_vm1, %v295_v44  ;;  %556 = vst.msk [vmem:[%s874_s2 + $0x40] sm:$0xff] %vm288_vm1, %v312_v45  ;;  %v403_v38 = vsub.f32 %v928_v6, %v263_v50 }
  0xcf   : > { %568 = vst.msk [vmem:[%s874_s2 + $0x20] sm:$0xff] %vm288_vm1, %v379_v46  ;;  %572 = vst.msk [vmem:[%s874_s2 + $0x60] sm:$0xff] %vm288_vm1, %v396_v47  ;;  %v402_v39 = vsub.f32 %v914_v1, %v262_v51  ;;  %v405_v7 = vsel %vm976_vm5, %v401_v48, 0.0  ;;  %v404_v2 = vsel %vm271_vm3, %v400_v49, 0.0 }
  0xd0   : > { %v412_v52 = vmul.f32 %v405_v7, %v405_v7  ;;  %v429_v32 = vand.u32 2147483647, %v405_v7  ;;  %v411_v33 = vmul.f32 %v404_v2, %v404_v2  ;;  %v428_v53 = vand.u32 2147483647, %v404_v2 }
  0xd1   : > { %v407_v54 = vsel %vm976_vm5, %v403_v38, 0.0  ;;  %v406_v1 = vsel %vm271_vm3, %v402_v39, 0.0 }
  0xd2   : > { %v414_v6 = vmul.f32 %v407_v54, %v407_v54  ;;  %v431_v55 = vand.u32 2147483647, %v407_v54  ;;  %v413_v56 = vmul.f32 %v406_v1, %v406_v1  ;;  %v430_v57 = vand.u32 2147483647, %v406_v1 }
  0xd3   : > { %v418_v58 = vsel %vm288_vm1, %v412_v52, 0.0  ;;  %v435_v59 = vsel %vm288_vm1, %v429_v32, 0.0  ;;  %v415_v60 = vsel %vm288_vm1, %v411_v33, 0.0  ;;  %v432_v61 = vsel %vm288_vm1, %v428_v53, 0.0 }
  0xd4   : > { %v419_v63 = vsel %vm288_vm1, %v414_v6, 0.0  ;;  %v436_v16 = vsel %vm288_vm1, %v431_v55, 0.0  ;;  %v416_v4 = vsel %vm288_vm1, %v413_v56, 0.0  ;;  %v433_v5 = vsel %vm288_vm1, %v430_v57, 0.0 }
  0xd5   : > { %v420_v8 = vadd.f32 %v419_v63, %v418_v58  ;;  %v437_v9 = vadd.f32 %v436_v16, %v435_v59  ;;  %v417_v10 = vadd.f32 %v416_v4, %v415_v60  ;;  %v434_v11 = vadd.f32 %v433_v5, %v432_v61 }
  0xd7   : > { %v422_v12 = vadd.f32 %v575_v62, %v420_v8  ;;  %v439_v13 = vadd.f32 %v579_v34, %v437_v9  ;;  %v421_v14 = vadd.f32 %v574_v0, %v417_v10  ;;  %v438_v15 = vadd.f32 %v578_v3, %v434_v11 }
  0xd9   : > { %577 = vst.msk [vmem:[%s874_s2 + $0x38] sm:$0xff] %vm288_vm1, %v422_v12  ;;  %581 = vst.msk [vmem:[%s874_s2 + $0x78] sm:$0xff] %vm288_vm1, %v439_v13 }
  0xda   : > { %576 = vst.msk [vmem:[%s874_s2 + $0x30] sm:$0xff] %vm288_vm1, %v421_v14  ;;  %580 = vst.msk [vmem:[%s874_s2 + $0x70] sm:$0xff] %vm288_vm1, %v438_v15 }
  0xdb PF: > { %s14_s13 = sadd.s32 1, %s761_s13   ;;  %s1172_s6 = smov %s737_s7 }
  0xdc   : > { %p11_p7 = scmp.ge.s32.totalorder %s14_s13, 6   ;;  %s1173_s7 = smov %s741_s8 }
  0xdd   : > { %s1174_s8 = smov %s845_s28  ;;  %s1175_s9 = smov %s753_s11 }
  0xde   : > { %s1176_s10 = smov %s757_s12  ;;  %s1177_s11 = smov %s1180_s15 }
  0xdf   : > { %s1178_s12 = smov %s1184_s16  ;;  %13 = sbr.rel (!%p11_p7) target bundleno = 5 (0x5), region = 76 }
  0xe4   :  { %480 = vsyncpa [#allocation3], 1 }
  0xe5   :  { %482 = vsyncpa [#allocation3 + $0x1], 1 }

</bundles_post_ra>
